<compile_context>
chip_gen: v7x
topology: tpu7x:2x2x1
jax: 0.10.0
libtpu: 0.0.40
codegen_flags: <defaults>
</compile_context>

<pallas_src>
import math

import jax
import jax.numpy as jnp
from jax.experimental import pallas as pl
from jax.experimental.pallas import tpu as pltpu

STATE_DIM = 3    # Pendulum-v1 observation_space.shape[0]
ACTION_DIM = 1   # Pendulum-v1 action_space.shape[0]
HIDDEN = 256


def _round_up(x, m):
    return ((x + m - 1) // m) * m


def _choose_tiling(B, tile_b):
    """Balanced batch tiling: (tile_rows, padded_batch, n_tiles)."""
    n = max(1, pl.cdiv(B, tile_b))
    # v7x has 2 TensorCores; give the "parallel" grid axis >= 2 steps once the
    # batch is large enough that each core still gets a substantial tile.
    if n == 1 and B >= 1024:
        n = 2
    TB = _round_up(pl.cdiv(B, n), 8)    # sublane-aligned, balanced tail
    return TB, n * TB, n


def _critic_kernel(x_ref, w1_ref, b1_ref, w2_ref, b2_ref, w3_ref, b3_ref,
                   q_ref):
    """relu(x@W1 + b1) -> relu(.@W2 + b2) -> .@W3 + b3, fully fused."""
    x = x_ref[...]                                            # (TB, 4) f32

    # --- layer 1 on the VPU: K = 4, an MXU matmul would be pure load/drain ---
    h1 = x[:, 0:1] * w1_ref[0:1, :]
    for k in range(1, x.shape[1]):
        h1 = h1 + x[:, k:k + 1] * w1_ref[k:k + 1, :]
    h1 = jnp.maximum(h1 + b1_ref[...], 0.0)                   # (TB, H) f32

    # --- layer 2: the one real matmul -- bf16 operands, f32 MXU accumulation ---
    h2 = jnp.dot(h1.astype(jnp.bfloat16), w2_ref[...],
                 preferred_element_type=jnp.float32)
    h2 = jnp.maximum(h2 + b2_ref[...], 0.0)                   # (TB, H) f32

    # --- layer 3 on VPU + XLU: N = 1 would waste the systolic array ---
    q = jnp.sum(h2 * w3_ref[...], axis=-1, keepdims=True)     # (TB, 1)
    q_ref[...] = (q + b3_ref[...]).astype(q_ref.dtype)


def critic_forward(state, action, params, *, tile_b=2048):
    """state: (B, state_dim), action: (B, action_dim) -> q: (B, 1)."""
    w1, b1, w2, b2, w3, b3 = params

    # torch.cat([state, action], 1) folded into the wrapper (cheap XLA op);
    # one lane-padded narrow input instead of two.
    x = jnp.concatenate([state, action], axis=1).astype(jnp.float32)
    B, K = x.shape
    H = w2.shape[0]

    # bf16 weights for the MXU matmul (halves resident VMEM + weight DMA).
    w2_bf16 = w2.astype(jnp.bfloat16)

    TB, Bp, n_tiles = _choose_tiling(B, tile_b)
    if Bp != B:
        x = jnp.pad(x, ((0, Bp - B), (0, 0)))

    const = lambda i: (0, 0)   # weights/biases stay VMEM-resident across steps

    q = pl.pallas_call(
        _critic_kernel,
        out_shape=jax.ShapeDtypeStruct((Bp, 1), jnp.float32),
        grid=(n_tiles,),
        in_specs=[
            pl.BlockSpec((TB, K), lambda i: (i, 0)),    # x tile (state|action)
            pl.BlockSpec((K, H), const),                # W1
            pl.BlockSpec((1, H), const),                # b1
            pl.BlockSpec((H, H), const),                # W2 (bf16)
            pl.BlockSpec((1, H), const),                # b2
            pl.BlockSpec((1, H), const),                # W3 (row)
            pl.BlockSpec((1, 1), const),                # b3
        ],
        out_specs=pl.BlockSpec((TB, 1), lambda i: (i, 0)),
        compiler_params=pltpu.CompilerParams(
            dimension_semantics=("parallel",)),         # megacore on v7x
    )(x, w1, b1, w2_bf16, b2, w3, b3)

    return q[:B]


def init_critic_params(key, state_dim=STATE_DIM, action_dim=ACTION_DIM,
                       hidden=HIDDEN):
    """Deterministic init mimicking nn.Linear default (U[-1/sqrt(fan_in), +])."""
    fan_in = state_dim + action_dim
    key, kw, kb = jax.random.split(key, 3)
    bound = 1.0 / math.sqrt(fan_in)
    w1 = jax.random.uniform(kw, (fan_in, hidden), jnp.float32, -bound, bound)
    b1 = jax.random.uniform(kb, (1, hidden), jnp.float32, -bound, bound)

    key, kw, kb = jax.random.split(key, 3)
    bound = 1.0 / math.sqrt(hidden)
    w2 = jax.random.uniform(kw, (hidden, hidden), jnp.float32, -bound, bound)
    b2 = jax.random.uniform(kb, (1, hidden), jnp.float32, -bound, bound)

    key, kw, kb = jax.random.split(key, 3)
    w3 = jax.random.uniform(kw, (1, hidden), jnp.float32, -bound, bound)
    b3 = jax.random.uniform(kb, (1, 1), jnp.float32, -bound, bound)

    return (w1, b1, w2, b2, w3, b3)


if __name__ == "__main__":
    key = jax.random.PRNGKey(0)
    k_params, k_state, k_action = jax.random.split(key, 3)

    params = init_critic_params(k_params)

    B = 8
    state = jax.random.normal(k_state, (B, STATE_DIM), jnp.float32)
    action = jax.random.normal(k_action, (B, ACTION_DIM), jnp.float32)

    q = critic_forward(state, action, params)
    jax.block_until_ready(q)

    # Reference check in plain f32 JAX (same math as the PyTorch module).
    # Layer 2 runs in bf16 on the MXU, so tolerance is loosened accordingly.
    w1, b1, w2, b2, w3, b3 = params
    x = jnp.concatenate([state, action], axis=1)
    h = jnp.maximum(x @ w1 + b1, 0.0)
    h = jnp.maximum(h @ w2 + b2, 0.0)
    q_ref = h @ w3.T + b3
    assert q.shape == (B, 1)
    assert jnp.allclose(q, q_ref, atol=2e-2, rtol=2e-2), "mismatch vs reference"

    print("KERNEL_OK")
</pallas_src>

<mosaic_0001>
module attributes {stable_mosaic.version = 11 : i64} {
  func.func @_critic_kernel(%arg0: i32, %arg1: memref<8x4xf32, #tpu.memory_space<vmem>>, %arg2: memref<4x256xf32, #tpu.memory_space<vmem>>, %arg3: memref<1x256xf32, #tpu.memory_space<vmem>>, %arg4: memref<256x256xbf16, #tpu.memory_space<vmem>>, %arg5: memref<1x256xf32, #tpu.memory_space<vmem>>, %arg6: memref<1x256xf32, #tpu.memory_space<vmem>>, %arg7: memref<1x1xf32, #tpu.memory_space<vmem>>, %arg8: memref<8x1xf32, #tpu.memory_space<vmem>>) attributes {dimension_semantics = [#tpu.dimension_semantics<parallel>], iteration_bounds = array<i64: 1>, scalar_prefetch = 0 : i64, scratch_operands = 0 : i64, tpu.core_type = #tpu.core_type<tc>, window_params = [{transform_indices = @transform_0, window_bounds = array<i64: 8, 4>}, {pipeline_mode = #tpu.pipeline_mode<synchronous>, transform_indices = @transform_1, window_bounds = array<i64: 4, 256>}, {pipeline_mode = #tpu.pipeline_mode<synchronous>, transform_indices = @transform_2, window_bounds = array<i64: 1, 256>}, {pipeline_mode = #tpu.pipeline_mode<synchronous>, transform_indices = @transform_3, window_bounds = array<i64: 256, 256>}, {pipeline_mode = #tpu.pipeline_mode<synchronous>, transform_indices = @transform_4, window_bounds = array<i64: 1, 256>}, {pipeline_mode = #tpu.pipeline_mode<synchronous>, transform_indices = @transform_5, window_bounds = array<i64: 1, 256>}, {pipeline_mode = #tpu.pipeline_mode<synchronous>, transform_indices = @transform_6, window_bounds = array<i64: 1, 1>}, {transform_indices = @transform_7, window_bounds = array<i64: 8, 1>}]} {
    %c0 = arith.constant 0 : index
    %c0_0 = arith.constant 0 : index
    %0 = vector.load %arg1[%c0, %c0_0] : memref<8x4xf32, #tpu.memory_space<vmem>>, vector<8x4xf32>
    %1 = vector.extract_strided_slice %0 {offsets = [0, 0], sizes = [8, 1], strides = [1, 1]} : vector<8x4xf32> to vector<8x1xf32>
    %c0_1 = arith.constant 0 : index
    %c0_2 = arith.constant 0 : index
    %2 = vector.load %arg2[%c0_1, %c0_2] : memref<4x256xf32, #tpu.memory_space<vmem>>, vector<1x256xf32>
    %3 = vector.broadcast %1 : vector<8x1xf32> to vector<8x256xf32>
    %4 = vector.broadcast %2 : vector<1x256xf32> to vector<8x256xf32>
    %5 = arith.mulf %3, %4 : vector<8x256xf32>
    %6 = vector.extract_strided_slice %0 {offsets = [0, 1], sizes = [8, 1], strides = [1, 1]} : vector<8x4xf32> to vector<8x1xf32>
    %c1 = arith.constant 1 : index
    %c0_3 = arith.constant 0 : index
    %7 = vector.load %arg2[%c1, %c0_3] : memref<4x256xf32, #tpu.memory_space<vmem>>, vector<1x256xf32>
    %8 = vector.broadcast %6 : vector<8x1xf32> to vector<8x256xf32>
    %9 = vector.broadcast %7 : vector<1x256xf32> to vector<8x256xf32>
    %10 = arith.mulf %8, %9 : vector<8x256xf32>
    %11 = arith.addf %5, %10 : vector<8x256xf32>
    %12 = vector.extract_strided_slice %0 {offsets = [0, 2], sizes = [8, 1], strides = [1, 1]} : vector<8x4xf32> to vector<8x1xf32>
    %c2 = arith.constant 2 : index
    %c0_4 = arith.constant 0 : index
    %13 = vector.load %arg2[%c2, %c0_4] : memref<4x256xf32, #tpu.memory_space<vmem>>, vector<1x256xf32>
    %14 = vector.broadcast %12 : vector<8x1xf32> to vector<8x256xf32>
    %15 = vector.broadcast %13 : vector<1x256xf32> to vector<8x256xf32>
    %16 = arith.mulf %14, %15 : vector<8x256xf32>
    %17 = arith.addf %11, %16 : vector<8x256xf32>
    %18 = vector.extract_strided_slice %0 {offsets = [0, 3], sizes = [8, 1], strides = [1, 1]} : vector<8x4xf32> to vector<8x1xf32>
    %c3 = arith.constant 3 : index
    %c0_5 = arith.constant 0 : index
    %19 = vector.load %arg2[%c3, %c0_5] : memref<4x256xf32, #tpu.memory_space<vmem>>, vector<1x256xf32>
    %20 = vector.broadcast %18 : vector<8x1xf32> to vector<8x256xf32>
    %21 = vector.broadcast %19 : vector<1x256xf32> to vector<8x256xf32>
    %22 = arith.mulf %20, %21 : vector<8x256xf32>
    %23 = arith.addf %17, %22 : vector<8x256xf32>
    %c0_6 = arith.constant 0 : index
    %c0_7 = arith.constant 0 : index
    %24 = vector.load %arg3[%c0_6, %c0_7] : memref<1x256xf32, #tpu.memory_space<vmem>>, vector<1x256xf32>
    %25 = vector.broadcast %24 : vector<1x256xf32> to vector<8x256xf32>
    %26 = arith.addf %23, %25 : vector<8x256xf32>
    %cst = arith.constant 0.000000e+00 : f32
    %27 = vector.broadcast %cst : f32 to vector<8x256xf32>
    %28 = arith.maximumf %26, %27 : vector<8x256xf32>
    %29 = arith.truncf %28 : vector<8x256xf32> to vector<8x256xbf16>
    %c0_8 = arith.constant 0 : index
    %c0_9 = arith.constant 0 : index
    %30 = vector.load %arg4[%c0_8, %c0_9] : memref<256x256xbf16, #tpu.memory_space<vmem>>, vector<256x256xbf16>
    %cst_10 = arith.constant dense<0.000000e+00> : vector<8x256xf32>
    %31 = tpu.matmul %29, %30, %cst_10 {dimension_numbers = #tpu.dot_dimension_numbers<[1], [0], [0], [1], [0, 0, 1, 1], [], []>} : vector<8x256xbf16>, vector<256x256xbf16>, vector<8x256xf32> -> vector<8x256xf32>
    %c0_11 = arith.constant 0 : index
    %c0_12 = arith.constant 0 : index
    %32 = vector.load %arg5[%c0_11, %c0_12] : memref<1x256xf32, #tpu.memory_space<vmem>>, vector<1x256xf32>
    %33 = vector.broadcast %32 : vector<1x256xf32> to vector<8x256xf32>
    %34 = arith.addf %31, %33 : vector<8x256xf32>
    %cst_13 = arith.constant 0.000000e+00 : f32
    %35 = vector.broadcast %cst_13 : f32 to vector<8x256xf32>
    %36 = arith.maximumf %34, %35 : vector<8x256xf32>
    %c0_14 = arith.constant 0 : index
    %c0_15 = arith.constant 0 : index
    %37 = vector.load %arg6[%c0_14, %c0_15] : memref<1x256xf32, #tpu.memory_space<vmem>>, vector<1x256xf32>
    %38 = vector.broadcast %37 : vector<1x256xf32> to vector<8x256xf32>
    %39 = arith.mulf %36, %38 : vector<8x256xf32>
    %cst_16 = arith.constant dense<0.000000e+00> : vector<8xf32>
    %40 = vector.multi_reduction <add>, %39, %cst_16 [1] : vector<8x256xf32> to vector<8xf32>
    %41 = vector.shape_cast %40 : vector<8xf32> to vector<8x1xf32>
    %c0_17 = arith.constant 0 : index
    %c0_18 = arith.constant 0 : index
    %42 = vector.load %arg7[%c0_17, %c0_18] : memref<1x1xf32, #tpu.memory_space<vmem>>, vector<1x1xf32>
    %43 = vector.broadcast %42 : vector<1x1xf32> to vector<8x1xf32>
    %44 = arith.addf %41, %43 : vector<8x1xf32>
    %c0_19 = arith.constant 0 : index
    %c0_20 = arith.constant 0 : index
    %45 = vector.load %arg8[%c0_19, %c0_20] : memref<8x1xf32, #tpu.memory_space<vmem>>, vector<8x1xf32>
    tpu.vector_store %arg8[%c0_19, %c0_20], %44 {strides = array<i32>} : memref<8x1xf32, #tpu.memory_space<vmem>>, vector<8x1xf32>,
    return
  }
  func.func @transform_0(%arg0: i32) -> (i32, i32) {
    %c0_i32 = arith.constant 0 : i32
    %c0_i32_0 = arith.constant 0 : i32
    return %arg0, %c0_i32 : i32, i32
  }
  func.func @transform_1(%arg0: i32) -> (i32, i32) {
    %c0_i32 = arith.constant 0 : i32
    %c0_i32_0 = arith.constant 0 : i32
    %c0_i32_1 = arith.constant 0 : i32
    return %c0_i32, %c0_i32_0 : i32, i32
  }
  func.func @transform_2(%arg0: i32) -> (i32, i32) {
    %c0_i32 = arith.constant 0 : i32
    %c0_i32_0 = arith.constant 0 : i32
    %c0_i32_1 = arith.constant 0 : i32
    return %c0_i32, %c0_i32_0 : i32, i32
  }
  func.func @transform_3(%arg0: i32) -> (i32, i32) {
    %c0_i32 = arith.constant 0 : i32
    %c0_i32_0 = arith.constant 0 : i32
    %c0_i32_1 = arith.constant 0 : i32
    return %c0_i32, %c0_i32_0 : i32, i32
  }
  func.func @transform_4(%arg0: i32) -> (i32, i32) {
    %c0_i32 = arith.constant 0 : i32
    %c0_i32_0 = arith.constant 0 : i32
    %c0_i32_1 = arith.constant 0 : i32
    return %c0_i32, %c0_i32_0 : i32, i32
  }
  func.func @transform_5(%arg0: i32) -> (i32, i32) {
    %c0_i32 = arith.constant 0 : i32
    %c0_i32_0 = arith.constant 0 : i32
    %c0_i32_1 = arith.constant 0 : i32
    return %c0_i32, %c0_i32_0 : i32, i32
  }
  func.func @transform_6(%arg0: i32) -> (i32, i32) {
    %c0_i32 = arith.constant 0 : i32
    %c0_i32_0 = arith.constant 0 : i32
    %c0_i32_1 = arith.constant 0 : i32
    return %c0_i32, %c0_i32_0 : i32, i32
  }
  func.func @transform_7(%arg0: i32) -> (i32, i32) {
    %c0_i32 = arith.constant 0 : i32
    %c0_i32_0 = arith.constant 0 : i32
    return %arg0, %c0_i32 : i32, i32
  }
}

</mosaic_0001>

<bundles_post_ra>
// kernel: tpu_custom_call.1
= control target key start
LH: loop header
LB: loop body
LE: loop exit
PB: predicated region body
PF: predicated region fallthrough
CT: control target
= control target key end

     0   :  { %s631_s0 = inlined_call_operand.vmem [shape: f32[8,4], index: 0, kind: input, shape index: {}]   ;;  %s632_s1 = inlined_call_operand.vmem [shape: f32[4,256], index: 1, kind: input, shape index: {}]   ;;  %s633_s2 = inlined_call_operand.vmem [shape: f32[1,256], index: 2, kind: input, shape index: {}]   ;;  %s634_s3 = inlined_call_operand.hbm [shape: bf16[256,256], index: 3, kind: input, shape index: {}]   ;;  %s635_s4 = inlined_call_operand.vmem [shape: f32[1,256], index: 4, kind: input, shape index: {}]   ;;  %s636_s5 = inlined_call_operand.vmem [shape: f32[1,256], index: 5, kind: input, shape index: {}]   ;;  %s637_s6 = inlined_call_operand.<no memory space> [shape: f32[1,1], index: 6, kind: input, shape index: {}]   ;;  %s638_s7 = inlined_call_operand.vmem [shape: f32[8,1], index: 7, kind: output, shape index: {}]  }
   0x1   :  { %v12_v0 = vstv %s637_s6 }
   0x2   :  { %13 = vst [vmem:[#allocation2] sm:$0x1] %v12_v0 }
   0x3   :  { %14 = vsyncpa [#allocation4], 0  ;;  %s542_s26 = smov [#allocation3]   ;;  %s518_s30 = scalar_lea.hbm %s634_s3, 4096 }
   0x4   :  { %s26_s27 = sshll.u32 %s542_s26, 4  ;;  %p519_p0 = scmp.ne.s32.totalorder %s634_s3, %s518_s30  ;;  %s27_s27 = int_to_ptr.vmem [resolvable:$true] %s26_s27 }
   0x5   :  { %p522_p1 = scmp.lt.u32.totalorder %s518_s30, %s634_s3 }
   0x7   :  { %p524_p2 = pnand %p522_p1, %p519_p0 }
   0x9   :  { %527 = shalt.err (!%p524_p2)
}
   0xa   :  { %s528_s6 = scalar_lea.vmem %s27_s27, 4096  ;;  %p533_p4 = scmp.lt.s32.totalorder %s27_s27, %s27_s27 }
   0xb   :  { %p529_p3 = scmp.ne.s32.totalorder %s27_s27, %s528_s6  ;;  %p534_p5 = scmp.lt.s32.totalorder %s528_s6, %s528_s6 }
   0xd   :  { %p535_p6 = por %p534_p5, %p533_p4 }
   0xf   :  { %p536_p7 = pnand %p535_p6, %p529_p3 }
  0x11   :  { %539 = shalt.err (!%p536_p7)
}
  0x12   :  { %s543_s12 = smov 128   ;;  %s544_s13 = smov 8  }
  0x13   :  { %32 = dma.hbm_to_vmem [thread:$0]  %s634_s3, 4096, %s27_s27, [#allocation4], %s543_s12, %s543_s12, %s544_s13  }
  0x14   :  { %540 = dma.done.wait [#allocation4], 4096  }
  0x15   :  { %541 = vsyncadd [#allocation4], 4294963200  ;;  %v545_v1 = vmov 0   ;;  %v546_v2 = vmov 2   ;;  %v42_v3 = vld [vmem:[%s631_s0] sm:$0xff]  ;;  %v547_v8 = vmov 1   ;;  %v50_v38 = vlaneseq }
  0x16   :  { %465 = vset.pattern.permute.xlu0 %v545_v1  ;;  %467 = vset.pattern.permute.xlu1 %v546_v2  ;;  %v470_v4 = vld [vmem:[#allocation3 + $0x4] ss:$8 sps:$4 sm:$0xff]   ;;  %v472_v5 = vld [vmem:[#allocation3] ss:$8 sps:$4 sm:$0xff]   ;;  %v473_v6 = vld [vmem:[#allocation3 + $0x14] ss:$8 sps:$4 sm:$0xff]  }
  0x17   :  { %46 = vperm.xlu0 %465, %v42_v3   ;;  %86 = vperm.xlu1 %467, %v42_v3   ;;  %v475_v7 = vld [vmem:[#allocation3 + $0x10] ss:$8 sps:$4 sm:$0xff]   ;;  %v548_v9 = vmov 3   ;;  %v476_v10 = vld [vmem:[#allocation3 + $0x24] ss:$8 sps:$4 sm:$0xff]   ;;  %v51_v39 = vshrl.u32 %v50_v38, 7 }
  0x18   :  { %347 = vmatprep.subr.bf16.mxu0 %v470_v4  ;;  %v478_v11 = vld [vmem:[#allocation3 + $0x20] ss:$8 sps:$4 sm:$0xff]   ;;  %v479_v12 = vld [vmem:[#allocation3 + $0x34] ss:$8 sps:$4 sm:$0xff]   ;;  %v481_v13 = vld [vmem:[#allocation3 + $0x30] ss:$8 sps:$4 sm:$0xff]  }
  0x19   :  { %348 = vmatpush1.bf16.msra.mxu0 %v472_v5  ;;  %v482_v14 = vld [vmem:[#allocation3 + $0x44] ss:$8 sps:$4 sm:$0xff]   ;;  %v484_v15 = vld [vmem:[#allocation3 + $0x40] ss:$8 sps:$4 sm:$0xff]   ;;  %v485_v16 = vld [vmem:[#allocation3 + $0x54] ss:$8 sps:$4 sm:$0xff]  }
  0x1a   :  { %349 = vmatprep.subr.bf16.mxu0 %v473_v6  ;;  %v487_v17 = vld [vmem:[#allocation3 + $0x50] ss:$8 sps:$4 sm:$0xff]   ;;  %v488_v18 = vld [vmem:[#allocation3 + $0x64] ss:$8 sps:$4 sm:$0xff]   ;;  %v490_v19 = vld [vmem:[#allocation3 + $0x60] ss:$8 sps:$4 sm:$0xff]  }
  0x1b   :  { %466 = vset.pattern.permute.xlu0 %v547_v8  ;;  %468 = vset.pattern.permute.xlu1 %v548_v9  ;;  %v491_v20 = vld [vmem:[#allocation3 + $0x74] ss:$8 sps:$4 sm:$0xff]   ;;  %v493_v21 = vld [vmem:[#allocation3 + $0x70] ss:$8 sps:$4 sm:$0xff]   ;;  %v494_v22 = vld [vmem:[#allocation3 + $0x84] ss:$8 sps:$4 sm:$0xff]  }
  0x1c   :  { %65 = vperm.xlu0 %466, %v42_v3   ;;  %107 = vperm.xlu1 %468, %v42_v3   ;;  %v496_v23 = vld [vmem:[#allocation3 + $0x80] ss:$8 sps:$4 sm:$0xff]   ;;  %v497_v24 = vld [vmem:[#allocation3 + $0x94] ss:$8 sps:$4 sm:$0xff]   ;;  %v499_v25 = vld [vmem:[#allocation3 + $0x90] ss:$8 sps:$4 sm:$0xff]  }
  0x1d   :  { %350 = vmatpush1.bf16.msra.mxu0 %v475_v7  ;;  %v500_v26 = vld [vmem:[#allocation3 + $0xa4] ss:$8 sps:$4 sm:$0xff]   ;;  %v502_v27 = vld [vmem:[#allocation3 + $0xa0] ss:$8 sps:$4 sm:$0xff]   ;;  %v503_v28 = vld [vmem:[#allocation3 + $0xb4] ss:$8 sps:$4 sm:$0xff]  }
  0x1e   :  { %351 = vmatprep.subr.bf16.mxu0 %v476_v10  ;;  %v505_v29 = vld [vmem:[#allocation3 + $0xb0] ss:$8 sps:$4 sm:$0xff]   ;;  %v506_v30 = vld [vmem:[#allocation3 + $0xc4] ss:$8 sps:$4 sm:$0xff]   ;;  %v508_v31 = vld [vmem:[#allocation3 + $0xc0] ss:$8 sps:$4 sm:$0xff]  }
  0x1f   :  { %v509_v32 = vld [vmem:[#allocation3 + $0xd4] ss:$8 sps:$4 sm:$0xff]   ;;  %v511_v33 = vld [vmem:[#allocation3 + $0xd0] ss:$8 sps:$4 sm:$0xff]   ;;  %v512_v34 = vld [vmem:[#allocation3 + $0xe4] ss:$8 sps:$4 sm:$0xff]  }
  0x20   :  { %469 = vset.pattern.permute.xlu0 %v548_v9  ;;  %v514_v35 = vld [vmem:[#allocation3 + $0xe0] ss:$8 sps:$4 sm:$0xff]   ;;  %v515_v36 = vld [vmem:[#allocation3 + $0xf4] ss:$8 sps:$4 sm:$0xff]   ;;  %v517_v37 = vld [vmem:[#allocation3 + $0xf0] ss:$8 sps:$4 sm:$0xff]  }
  0x21   :  { %352 = vmatpush1.bf16.msra.mxu0 %v478_v11  ;;  %v52_v40 = vsub.s32 0, %v51_v39  ;;  %v56_v41 = vsub.s32 1, %v51_v39  ;;  %v43_v42 = vld [vmem:[%s632_s1] ss:$4 sm:$0x3]  ;;  %vm415_vm0 = vcmask 7168  }
  0x22   :  { %353 = vmatprep.subr.bf16.mxu0 %v479_v12  ;;  %v422_v43 = vld [vmem:[%s632_s1 + $0x1] ss:$4 sm:$0x3]  ;;  %v423_v45 = vld [vmem:[%s632_s1 + $0x2] ss:$4 sm:$0x3] }
  0x23   :  { %v424_v47 = vld [vmem:[%s632_s1 + $0x3] ss:$4 sm:$0x3]  ;;  %v53_v48 = vrot.slane %v43_v42, %v52_v40  ;;  %v57_v49 = vrot.slane %v43_v42, %v56_v41  ;;  %v72_v50 = vrot.slane %v422_v43, %v52_v40  ;;  %v76_v51 = vrot.slane %v422_v43, %v56_v41  ;;  %v125_v0 = vld [vmem:[%s633_s2] sm:$0x3] }
  0x24   :  { %v93_v52 = vrot.slane %v423_v45, %v52_v40  ;;  %v97_v53 = vrot.slane %v423_v45, %v56_v41  ;;  %v114_v54 = vrot.slane %v424_v47, %v52_v40  ;;  %v118_v55 = vrot.slane %v424_v47, %v56_v41 }
  0x25   :  { %354 = vmatpush1.bf16.msra.mxu0 %v481_v13  ;;  %v130_v7 = vrot.slane %v125_v0, %v52_v40  ;;  %v134_v8 = vrot.slane %v125_v0, %v56_v41 }
  0x26   :  { %355 = vmatprep.subr.bf16.mxu0 %v482_v14 }
  0x29   :  { %356 = vmatpush1.bf16.msra.mxu0 %v484_v15 }
  0x2a   :  { %357 = vmatprep.subr.bf16.mxu0 %v485_v16 }
  0x2d   :  { %358 = vmatpush1.bf16.msra.mxu0 %v487_v17  ;;  %v175_v17 = vld [vmem:[%s635_s4] sm:$0x3] }
  0x2e   :  { %359 = vmatprep.subr.bf16.mxu0 %v488_v18  ;;  %v180_v18 = vrot.slane %v175_v17, %v52_v40 }
  0x31   :  { %360 = vmatpush1.bf16.msra.mxu0 %v490_v19  ;;  %v390_v19 = vld [vmem:[%s636_s5] sm:$0x3] }
  0x32   :  { %361 = vmatprep.subr.bf16.mxu0 %v491_v20  ;;  %v184_v20 = vrot.slane %v175_v17, %v56_v41 }
  0x35   :  { %362 = vmatpush1.bf16.msra.mxu0 %v493_v21 }
  0x36   :  { %363 = vmatprep.subr.bf16.mxu0 %v494_v22 }
  0x39   :  { %364 = vmatpush1.bf16.msra.mxu0 %v496_v23  ;;  %v395_v23 = vrot.slane %v390_v19, %v52_v40 }
  0x3a   :  { %365 = vmatprep.subr.bf16.mxu0 %v497_v24 }
  0x3d   :  { %366 = vmatpush1.bf16.msra.mxu0 %v499_v25 }
  0x3e   :  { %367 = vmatprep.subr.bf16.mxu0 %v500_v26  ;;  %v399_v26 = vrot.slane %v390_v19, %v56_v41 }
  0x41   :  { %368 = vmatpush1.bf16.msra.mxu0 %v502_v27 }
  0x42   :  { %369 = vmatprep.subr.bf16.mxu0 %v503_v28 }
  0x45   :  { %370 = vmatpush1.bf16.msra.mxu0 %v505_v29 }
  0x46   :  { %371 = vmatprep.subr.bf16.mxu0 %v506_v30 }
  0x49   :  { %372 = vmatpush1.bf16.msra.mxu0 %v508_v31 }
  0x4a   :  { %373 = vmatprep.subr.bf16.mxu0 %v509_v32 }
  0x4d   :  { %374 = vmatpush1.bf16.msra.mxu0 %v511_v33 }
  0x4e   :  { %375 = vmatprep.subr.bf16.mxu0 %v512_v34  ;;  %v457_v34 = vld [vmem:[#allocation2] ss:$0 sm:$0xff] }
  0x51   :  { %376 = vmatpush1.bf16.msra.mxu0 %v514_v35 }
  0x52   :  { %377 = vmatprep.subr.bf16.mxu0 %v515_v36 }
  0x55   :  { %378 = vmatpush1.bf16.msra.mxu0 %v517_v37 }
  0x96   :  { %v47_v44 = vpop.permute.xlu0 %46  ;;  %v87_v46 = vpop.permute.xlu1 %86 }
  0x97   :  { %v60_v58 = vmul.f32 %v53_v48, %v47_v44  ;;  %v61_v59 = vmul.f32 %v57_v49, %v47_v44  ;;  %v100_v62 = vmul.f32 %v93_v52, %v87_v46  ;;  %v101_v63 = vmul.f32 %v97_v53, %v87_v46 }
  0x9b   :  { %v66_v56 = vpop.permute.xlu0 %65  ;;  %v108_v57 = vpop.permute.xlu1 %107 }
  0x9c   :  { %v79_v60 = vmul.f32 %v72_v50, %v66_v56  ;;  %v80_v61 = vmul.f32 %v76_v51, %v66_v56  ;;  %v121_v3 = vmul.f32 %v114_v54, %v108_v57  ;;  %v122_v4 = vmul.f32 %v118_v55, %v108_v57 }
  0x9e   :  { %v81_v1 = vadd.f32 %v79_v60, %v60_v58  ;;  %v82_v2 = vadd.f32 %v80_v61, %v61_v59 }
  0xa0   :  { %v102_v5 = vadd.f32 %v100_v62, %v81_v1  ;;  %v103_v6 = vadd.f32 %v101_v63, %v82_v2 }
  0xa2   :  { %v123_v9 = vadd.f32 %v121_v3, %v102_v5  ;;  %v124_v10 = vadd.f32 %v122_v4, %v103_v6 }
  0xa4   :  { %v138_v11 = vadd.f32 %v134_v8, %v124_v10  ;;  %v137_v12 = vadd.f32 %v130_v7, %v123_v9 }
  0xa6   :  { %v140_v13 = vmax.f32 %v138_v11, 0.0  ;;  %v139_v14 = vmax.f32 %v137_v12, 0.0 }
  0xa8   :  { %v142_v15 = vpack.c.bf16 %v140_v13, %v140_v13  ;;  %v141_v16 = vpack.c.bf16 %v139_v14, %v139_v14 }
  0xaa   :  { %379 = vmatprep.mubr.bf16.mxu0 %v142_v15 }
  0xab   :  { %380 = vmatmul.mubr.bf16.vlgmr.msra.gmra.mrb[0].mxu0 %v141_v16 }
 0x17e   :  { %v381_v21 = vpop.f32.mrb[0].mxu0 }
 0x17f   :  { %v382_v22 = vadd.f32 %v381_v21, %v180_v18  ;;  %v383_v24 = vpop.f32.mrb[1].mxu0 }
 0x180   :  { %v384_v25 = vadd.f32 %v383_v24, %v184_v20  ;;  %v385_v27 = vpop.f32.mrb[2].mxu0 }
 0x181   :  { %v388_v28 = vmax.f32 %v382_v22, 0.0  ;;  %v386_v29 = vpop.f32.mrb[3].mxu0 }
 0x182   :  { %v389_v30 = vmax.f32 %v384_v25, 0.0 }
 0x183   :  { %v402_v31 = vmul.f32 %v395_v23, %v388_v28 }
 0x184   :  { %v403_v32 = vmul.f32 %v399_v26, %v389_v30 }
 0x186   :  { %v404_v33 = vadd.f32 %v403_v32, %v402_v31 }
 0x188   :  { %405 = vadd.xlane.f32.xlu1 %v404_v33 }
 0x215   :  { %v406_v35 = vpop.xlane.xlu1 %405 }
 0x216   :  { %v414_v36 = vadd.f32 %v457_v34, %v406_v35 }
 0x218   :  { %416 = vst.msk [vmem:[%s638_s7] sm:$0xff] %vm415_vm0, %v414_v36 }
 0x219   :  { %421 = vsyncpa [#allocation4], 1 }

</bundles_post_ra>
